<compile_context>
chip_gen: v7x
topology: tpu7x:2x2x1
jax: 0.10.0
libtpu: 0.0.40
codegen_flags: <defaults>
</compile_context>

<pallas_src>
import math

import jax
import jax.numpy as jnp
from jax.experimental import pallas as pl
from jax.experimental.pallas import tpu as pltpu

EPS = 1e-4  # LogicCoordLoss.EPS == RegL1 eps == 1e-4

_LOG_LO = float(math.log(1e-4))
_LOG_HI = float(math.log(1.0 - 1e-4))


# ----------------------------- helpers -----------------------------

def _vmem_cap():
    try:
        return int(pltpu.get_tpu_info().vmem_capacity_bytes)
    except Exception:
        return 64 << 20  # conservative (v7x-sized) default


def _row_partial(t):
    """(rb, L) -> (8, L) partial sum using only vreg-wise (VPU) adds."""
    rb, lane = t.shape
    if rb % 8 == 0:
        # (rb, L) -> (rb//8, 8, L) is a pure view; sum over the leading dim is
        # element-wise adds of whole vregs (no XLU).
        return t.reshape(rb // 8, 8, lane).sum(axis=0)
    # Fallback for odd single-block shapes: full reduce placed at [0, 0].
    s = jnp.sum(t)
    sub = jax.lax.broadcasted_iota(jnp.int32, (8, lane), 0)
    ln = jax.lax.broadcasted_iota(jnp.int32, (8, lane), 1)
    return jnp.where((sub == 0) & (ln == 0), s, 0.0)


# ----------------------------- dense kernels -----------------------------

def _focal_kernel(logit_ref, gt_ref, out_ref):
    x = logit_ref[...].astype(jnp.float32)
    gt = gt_ref[...].astype(jnp.float32)

    # Stable fused _sigmoid + focal logs: one exp, one log, one EUP reciprocal.
    e = jnp.exp(-jnp.abs(x))
    log1pe = jnp.log(1.0 + e)
    inv = pl.reciprocal(1.0 + e, approx=True)
    is_pos = x >= 0.0
    p = jnp.where(is_pos, inv, e * inv)                 # sigmoid(x)
    log_p = jnp.where(is_pos, -log1pe, x - log1pe)      # log(sigmoid(x))
    log_q = jnp.where(is_pos, -x - log1pe, -log1pe)     # log(1 - sigmoid(x))

    # clamp(sigmoid(x), 1e-4, 1 - 1e-4) folded into p and both logs
    p = jnp.clip(p, 1e-4, 1.0 - 1e-4)
    log_p = jnp.clip(log_p, _LOG_LO, _LOG_HI)
    log_q = jnp.clip(log_q, _LOG_LO, _LOG_HI)

    pos = (gt == 1.0).astype(jnp.float32)
    neg = (gt < 1.0).astype(jnp.float32)
    omg = 1.0 - gt
    neg_w = (omg * omg) * (omg * omg)                   # (1 - gt)^4
    omp = 1.0 - p

    out_ref[0, 0:8, :] = _row_partial(log_p * (omp * omp) * pos)
    out_ref[0, 8:16, :] = _row_partial(log_q * (p * p) * neg_w * neg)
    out_ref[0, 16:24, :] = _row_partial(pos)


def _coord_l1_kernel(coord_ref, gt_ref, mask_ref, out_ref):
    c = coord_ref[...].astype(jnp.float32)
    g = gt_ref[...].astype(jnp.float32)
    m = mask_ref[...].astype(jnp.float32)
    delta = 1.0 - jnp.abs(g - jnp.round(g))             # _calc_logic_weights
    w = delta * delta
    out_ref[0, 0:8, :] = _row_partial(m * w * jnp.abs(c - g))   # factored L1
    out_ref[0, 8:16, :] = _row_partial(m)


def _dense_layout(total):
    # Prefer a lane-dense layout whose row count is a multiple of 8.
    for lane in (2048, 1024, 512, 256, 128):
        if total % lane == 0 and (total // lane) % 8 == 0:
            return total // lane, lane
    for lane in (2048, 1024, 512, 256, 128):
        if total % lane == 0:
            return total // lane, lane
    return 1, total


def _largest_row_block(rows, cap_rows):
    # largest rb with rb | rows, rb % 8 == 0, rb <= cap_rows  (rows % 8 == 0)
    best = 8
    r8 = rows // 8
    d = 1
    while d * d <= r8:
        if r8 % d == 0:
            for q in (d, r8 // d):
                rb = q * 8
                if best < rb <= cap_rows:
                    best = rb
        d += 1
    return best


def _dense_sums(kernel, n_out, arrays):
    total = int(arrays[0].size)
    rows, lane = _dense_layout(total)
    flats = [a.reshape(rows, lane) for a in arrays]

    cap = _vmem_cap()
    budget = min(16 << 20, cap // 8)                    # ~16 MiB v5e/v6e, 8 MiB v7x
    if rows % 8 == 0:
        cap_rows = max(8, (budget // (len(arrays) * 2 * lane * 4)) // 8 * 8)
        rb = _largest_row_block(rows, cap_rows)
    else:
        rb = rows                                        # single full block
    steps = rows // rb

    need = len(arrays) * 2 * rb * lane * 4 + 2 * n_out * 8 * lane * 4 + (4 << 20)
    vmem_limit = int(min(cap - (8 << 20), max(need, 32 << 20)))

    out = pl.pallas_call(
        kernel,
        out_shape=jax.ShapeDtypeStruct((steps, n_out * 8, lane), jnp.float32),
        grid=(steps,),
        in_specs=[pl.BlockSpec((rb, lane), lambda i: (i, 0)) for _ in arrays],
        out_specs=pl.BlockSpec((1, n_out * 8, lane), lambda i: (i, 0, 0)),
        compiler_params=pltpu.CompilerParams(
            dimension_semantics=("parallel",),
            vmem_limit_bytes=vmem_limit),
    )(*flats)
    # Tiny cross-lane reduce done once, outside the kernel.
    return jnp.sum(out.reshape(steps, n_out, 8 * lane), axis=(0, 2))


# ------------------------- fused sparse (gather) kernel -------------------------

def _sparse_kernel(reg_ind, ct_ind, cn_ind, lc_ind,                 # SMEM scalar prefetch
                   reg_mask, reg_tgt, ct_mask, ct2cn_tgt,
                   cn_mask, cn2ct_tgt, lc_span,                     # small VMEM blocks (1, C, N)
                   reg_map, ct2cn_map, cn2ct_map, lc_map, sp_map,   # whole-batch maps (1, C, H, W)
                   out_ref,                                         # SMEM (9,)
                   acc):                                            # SMEM (9,) accumulator
    b = pl.program_id(0)
    w_dim = reg_map.shape[3]
    nr = reg_ind.shape[1]
    nc = ct_ind.shape[1]
    nm = cn_ind.shape[1]

    @pl.when(b == 0)
    def _init():
        for i in range(9):
            acc[i] = 0.0

    lane_x = jax.lax.broadcasted_iota(jnp.int32, (1, 1, w_dim), 2)

    def gather(map_ref, idx_fn, count):
        # In-VMEM gather: dynamic-sublane row slice + lane one-hot reduce.
        ch = map_ref.shape[1]
        cols = []
        for n in range(count):
            idx = idx_fn(n)                               # scalar int32 from SMEM
            y = idx // w_dim
            x = idx - y * w_dim
            row = map_ref[0, :, pl.ds(y, 1), :].astype(jnp.float32)   # (ch, 1, W)
            sel = (lane_x == x).astype(jnp.float32)                    # (1, 1, W)
            cols.append(jnp.sum(row * sel, axis=2))                    # (ch, 1)
        return jnp.concatenate(cols, axis=1)                           # (ch, count)

    def masked_l1(pred, mask_blk, tgt_blk):
        m = mask_blk[0].astype(jnp.float32)               # (1, n)
        t = tgt_blk[0].astype(jnp.float32)                # (ch, n)
        return (jnp.sum(m * jnp.abs(pred - t)),
                jnp.sum(m) * float(pred.shape[0]))        # mask expanded over C channels

    # ---- RegL1Loss ----
    reg_g = gather(reg_map, lambda n: reg_ind[b, n], nr)
    a, cnt = masked_l1(reg_g, reg_mask, reg_tgt)
    acc[0] += a
    acc[1] += cnt

    # ---- VecPairLoss gather terms (masked L1, RegL1-style) ----
    c2c_g = gather(ct2cn_map, lambda n: ct_ind[b, n], nc)
    a, cnt = masked_l1(c2c_g, ct_mask, ct2cn_tgt)
    acc[2] += a
    acc[3] += cnt

    cn_g = gather(cn2ct_map, lambda n: cn_ind[b, n], nm)
    a, cnt = masked_l1(cn_g, cn_mask, cn2ct_tgt)
    acc[4] += a
    acc[5] += cnt

    # ---- LogicCoordLoss span / span-diff terms ----
    # 4 corner matrices, each (2, nc): row 0 = col-coord, row 1 = row-coord.
    lc_g = [gather(lc_map, lambda n, k=k: lc_ind[b, n * 4 + k], nc) for k in range(4)]
    sp_g = gather(sp_map, lambda n: ct_ind[b, n], nc)     # (2, nc)

    c = [lc_g[k][0:1, :] for k in range(4)]
    r = [lc_g[k][1:2, :] for k in range(4)]
    csd0 = c[1] - c[0]
    csd1 = c[2] - c[3]
    rsd0 = r[3] - r[0]
    rsd1 = r[2] - r[1]

    col_sp = sp_g[0:1, :]
    row_sp = sp_g[1:2, :]
    ls = lc_span[0].astype(jnp.float32)                   # (2, nc)
    col_gt = ls[0:1, :]
    row_gt = ls[1:2, :]
    m = ct_mask[0].astype(jnp.float32)                    # (1, nc)

    def span_w(o1, o2, t):
        d = (jnp.abs(o1 - t) + jnp.abs(o2 - t)) * 5.0
        d = jnp.minimum(d, 1.0)
        return jnp.sin(1.570796 * d)                      # literal matches the reference

    w_c0 = span_w(col_sp, csd0, col_gt)
    w_c1 = span_w(col_sp, csd1, col_gt)
    w_r0 = span_w(row_sp, rsd0, row_gt)
    w_r1 = span_w(row_sp, rsd1, row_gt)

    acc[6] += (jnp.sum(m * w_c0 * jnp.abs(csd0 - col_gt))
               + jnp.sum(m * w_c1 * jnp.abs(csd1 - col_gt))
               + jnp.sum(m * w_r0 * jnp.abs(rsd0 - row_gt))
               + jnp.sum(m * w_r1 * jnp.abs(rsd1 - row_gt)))
    sw_c = (w_c0 + w_c1) * 0.5
    sw_r = (w_r0 + w_r1) * 0.5
    acc[7] += (jnp.sum(m * sw_c * jnp.abs(col_sp - col_gt))
               + jnp.sum(m * sw_r * jnp.abs(row_sp - row_gt)))
    acc[8] += jnp.sum(m) * 2.0                            # span_mask expanded to (N, 2)

    @pl.when(b == pl.num_programs(0) - 1)
    def _done():
        for i in range(9):
            out_ref[i] = acc[i]


def _sparse_losses(output, batch):
    B, _, H, W = output['reg'].shape
    hw_max = H * W - 1

    # Indices are clipped ONCE in the glue (vectorized), never per-index in-kernel.
    reg_ind = jnp.clip(batch['reg_ind'].astype(jnp.int32), 0, hw_max)
    ct_ind = jnp.clip(batch['ct_ind'].astype(jnp.int32), 0, hw_max)
    cn_ind = jnp.clip(batch['cn_ind'].astype(jnp.int32), 0, hw_max)
    lc_ind = jnp.clip(batch['lc_ind'].astype(jnp.int32).reshape(B, -1), 0, hw_max)

    nr, nc, nm = reg_ind.shape[1], ct_ind.shape[1], cn_ind.shape[1]

    # Tiny tensors go in lane-dense (C, N) orientation so the kernel never transposes.
    reg_mask = batch['reg_mask'].reshape(B, 1, nr).astype(jnp.float32)
    ct_mask = batch['ct_mask'].reshape(B, 1, nc).astype(jnp.float32)
    cn_mask = batch['cn_mask'].reshape(B, 1, nm).astype(jnp.float32)
    reg_tgt = jnp.swapaxes(batch['reg'], 1, 2).astype(jnp.float32)          # (B, 2, Nr)
    ct2cn_tgt = jnp.swapaxes(batch['ct2cn'], 1, 2).astype(jnp.float32)      # (B, 8, Nc)
    cn2ct_tgt = jnp.swapaxes(batch['cn2ct'], 1, 2).astype(jnp.float32)      # (B, 2, Nm)
    lc_span = jnp.swapaxes(batch['lc_span'], 1, 2).astype(jnp.float32)      # (B, 2, Nc)

    reg_map = output['reg']
    ct2cn_map = output['ct2cn']
    cn2ct_map = output['cn2ct']
    lc_map = output['lc']
    sp_map = output['sp']

    def small(c, n):
        return pl.BlockSpec((1, c, n), lambda b, *_: (b, 0, 0))

    def mapspec(c):
        return pl.BlockSpec((1, c, H, W), lambda b, *_: (b, 0, 0, 0))

    c_sum = (reg_map.shape[1] + ct2cn_map.shape[1] + cn2ct_map.shape[1]
             + lc_map.shape[1] + sp_map.shape[1])
    cap = _vmem_cap()
    need = 2 * c_sum * H * W * 4 + (8 << 20)
    vmem_limit = int(min(cap - (8 << 20), max(need, 32 << 20)))
    # TODO(synk): if 2 * sum(C) * H * W * 4B exceeds v7x's 64 MiB VMEM, pipeline the
    #             maps one at a time instead of keeping all five batch slabs resident.

    grid_spec = pltpu.PrefetchScalarGridSpec(
        num_scalar_prefetch=4,
        grid=(B,),
        in_specs=[small(1, nr), small(reg_tgt.shape[1], nr),
                  small(1, nc), small(ct2cn_tgt.shape[1], nc),
                  small(1, nm), small(cn2ct_tgt.shape[1], nm),
                  small(2, nc),
                  mapspec(reg_map.shape[1]), mapspec(ct2cn_map.shape[1]),
                  mapspec(cn2ct_map.shape[1]), mapspec(lc_map.shape[1]),
                  mapspec(sp_map.shape[1])],
        out_specs=pl.BlockSpec(memory_space=pltpu.MemorySpace.SMEM),
        scratch_shapes=[pltpu.SMEM((9,), jnp.float32)])

    return pl.pallas_call(
        _sparse_kernel,
        out_shape=jax.ShapeDtypeStruct((9,), jnp.float32),
        grid_spec=grid_spec,
        compiler_params=pltpu.CompilerParams(
            dimension_semantics=("arbitrary",),
            vmem_limit_bytes=vmem_limit),
    )(reg_ind, ct_ind, cn_ind, lc_ind,
      reg_mask, reg_tgt, ct_mask, ct2cn_tgt, cn_mask, cn2ct_tgt, lc_span,
      reg_map, ct2cn_map, cn2ct_map, lc_map, sp_map)


# ------------------------------ glue wrapper ------------------------------

def mtable_loss(outputs, batch, loss_weights):
    hm_w, reg_w, ct2cn_w, cn2ct_w, lc_w = loss_weights
    output = outputs[-1]

    # ---- FocalLoss (_sigmoid clamp fused, tiled, per-step VPU partials) ----
    fo = _dense_sums(_focal_kernel, 3, [output['hm'], batch['hm']])
    pos_sum, neg_sum, num_pos = fo[0], fo[1], fo[2]
    hm_loss = jnp.where(num_pos > 0,
                        -(pos_sum + neg_sum) / jnp.maximum(num_pos, 1.0),
                        -neg_sum)

    # ---- LogicCoordLoss: dense coordinate term ----
    co = _dense_sums(_coord_l1_kernel, 2,
                     [output['lc'], batch['lc'], batch['lc_mask']])
    lc_coord_loss = co[0] / (co[1] + EPS)

    # ---- fused gather losses: RegL1 + VecPair terms + LogicCoord span terms ----
    so = _sparse_losses(output, batch)
    reg_loss = so[0] / (so[1] + EPS)
    ct2cn_loss = so[2] / (so[3] + EPS)
    cn2ct_loss = so[4] / (so[5] + EPS)
    # TODO(synk): VecPairLoss source not provided; the invalid-corner term (ct_cn_ind) is
    #             not reproducible and is returned as 0.
    invalid_cn2ct_loss = jnp.float32(0.0)
    span_denom = so[8] + EPS
    lc_span_diff_loss = so[6] / span_denom
    lc_span_loss = so[7] / span_denom

    loss = (hm_w * hm_loss + reg_w * reg_loss + ct2cn_w * ct2cn_loss
            + cn2ct_w * (cn2ct_loss + invalid_cn2ct_loss)
            + lc_w * (lc_coord_loss + lc_span_diff_loss + lc_span_loss))
    loss_stats = {'loss': loss, 'hm': hm_loss, 'reg': reg_loss,
                  'ct2cn': ct2cn_loss, 'cn2ct': cn2ct_loss,
                  'icn2ct': invalid_cn2ct_loss, 'lc': lc_coord_loss,
                  'lsd': lc_span_diff_loss, 'ls': lc_span_loss}
    return loss, loss_stats


# ---------------------------------- main -----------------------------------

if __name__ == "__main__":
    key = jax.random.PRNGKey(0)
    B, H, W = 2, 16, 16
    HW = H * W
    C_hm = 2
    N = 8   # table cells
    M = 8   # corners

    keys = iter(jax.random.split(key, 24))
    output = {
        'hm':    jax.random.normal(next(keys), (B, C_hm, H, W), jnp.float32),
        'reg':   jax.random.normal(next(keys), (B, 2, H, W), jnp.float32),
        'ct2cn': jax.random.normal(next(keys), (B, 8, H, W), jnp.float32),
        'cn2ct': jax.random.normal(next(keys), (B, 2, H, W), jnp.float32),
        'lc':    jax.random.normal(next(keys), (B, 2, H, W), jnp.float32) * 3.0,
        'sp':    jax.random.normal(next(keys), (B, 2, H, W), jnp.float32),
    }

    hm_gt = jax.random.uniform(next(keys), (B, C_hm, H, W), dtype=jnp.float32) * 0.9
    hm_gt = hm_gt.at[:, :, 4, 4].set(1.0)   # plant exact-1 peaks (positive focal branch)

    batch = {
        'hm':        hm_gt,
        'reg_ind':   jax.random.randint(next(keys), (B, N), 0, HW, jnp.int32),
        'reg_mask':  (jax.random.uniform(next(keys), (B, N)) > 0.3).astype(jnp.float32),
        'reg':       jax.random.uniform(next(keys), (B, N, 2), dtype=jnp.float32),
        'ct_ind':    jax.random.randint(next(keys), (B, N), 0, HW, jnp.int32),
        'ct_mask':   (jax.random.uniform(next(keys), (B, N)) > 0.3).astype(jnp.float32),
        'ct2cn':     jax.random.normal(next(keys), (B, N, 8), jnp.float32),
        'cn_ind':    jax.random.randint(next(keys), (B, M), 0, HW, jnp.int32),
        'cn_mask':   (jax.random.uniform(next(keys), (B, M)) > 0.3).astype(jnp.float32),
        'cn2ct':     jax.random.normal(next(keys), (B, M, 2), jnp.float32),
        'ct_cn_ind': jax.random.randint(next(keys), (B, N), 0, M, jnp.int32),
        'lc_ind':    jax.random.randint(next(keys), (B, N, 4), 0, HW, jnp.int32),
        'lc_span':   jax.random.randint(next(keys), (B, N, 2), 1, 4).astype(jnp.float32),
        'lc':        jax.random.uniform(next(keys), (B, 2, H, W), dtype=jnp.float32) * 5.0,
        'lc_mask':   (jax.random.uniform(next(keys), (B, 2, H, W)) > 0.5).astype(jnp.float32),
    }

    loss_weights = (1.0, 1.0, 1.0, 1.0, 1.0)
    loss, stats = mtable_loss([output], batch, loss_weights)
    jax.block_until_ready(loss)
    print("KERNEL_OK")
</pallas_src>

<mosaic_0001>
module attributes {stable_mosaic.version = 11 : i64} {
  func.func @_focal_kernel(%arg0: i32, %arg1: memref<8x128xf32, #tpu.memory_space<vmem>>, %arg2: memref<8x128xf32, #tpu.memory_space<vmem>>, %arg3: memref<1x24x128xf32, #tpu.memory_space<vmem>>) attributes {dimension_semantics = [#tpu.dimension_semantics<parallel>], iteration_bounds = array<i64: 1>, scalar_prefetch = 0 : i64, scratch_operands = 0 : i64, tpu.core_type = #tpu.core_type<tc>, window_params = [{transform_indices = @transform_0, window_bounds = array<i64: 8, 128>}, {transform_indices = @transform_1, window_bounds = array<i64: 8, 128>}, {transform_indices = @transform_2, window_bounds = array<i64: 1, 24, 128>}]} {
    %c0 = arith.constant 0 : index
    %c0_0 = arith.constant 0 : index
    %0 = vector.load %arg1[%c0, %c0_0] : memref<8x128xf32, #tpu.memory_space<vmem>>, vector<8x128xf32>
    %c0_1 = arith.constant 0 : index
    %c0_2 = arith.constant 0 : index
    %1 = vector.load %arg2[%c0_1, %c0_2] : memref<8x128xf32, #tpu.memory_space<vmem>>, vector<8x128xf32>
    %2 = math.absf %0 : vector<8x128xf32>
    %cst = arith.constant 0.000000e+00 : f32
    %3 = vector.broadcast %cst : f32 to vector<8x128xf32>
    %4 = arith.subf %3, %2 : vector<8x128xf32>
    %5 = math.exp %4 : vector<8x128xf32>
    %cst_3 = arith.constant 1.000000e+00 : f32
    %6 = vector.broadcast %cst_3 : f32 to vector<8x128xf32>
    %7 = arith.addf %6, %5 : vector<8x128xf32>
    %8 = math.log %7 : vector<8x128xf32>
    %cst_4 = arith.constant 1.000000e+00 : f32
    %9 = vector.broadcast %cst_4 : f32 to vector<8x128xf32>
    %10 = arith.addf %9, %5 : vector<8x128xf32>
    %11 = tpu.reciprocal %10 {approx = true} : vector<8x128xf32> -> vector<8x128xf32>
    %cst_5 = arith.constant 0.000000e+00 : f32
    %12 = vector.broadcast %cst_5 : f32 to vector<8x128xf32>
    %13 = arith.cmpf oge, %0, %12 : vector<8x128xf32>
    %14 = arith.mulf %5, %11 : vector<8x128xf32>
    %15 = arith.select %13, %11, %14 : vector<8x128xi1>, vector<8x128xf32>
    %cst_6 = arith.constant 0.000000e+00 : f32
    %16 = vector.broadcast %cst_6 : f32 to vector<8x128xf32>
    %17 = arith.subf %16, %8 : vector<8x128xf32>
    %18 = arith.subf %0, %8 : vector<8x128xf32>
    %19 = arith.select %13, %17, %18 : vector<8x128xi1>, vector<8x128xf32>
    %cst_7 = arith.constant 0.000000e+00 : f32
    %20 = vector.broadcast %cst_7 : f32 to vector<8x128xf32>
    %21 = arith.subf %20, %0 : vector<8x128xf32>
    %22 = arith.subf %21, %8 : vector<8x128xf32>
    %cst_8 = arith.constant 0.000000e+00 : f32
    %23 = vector.broadcast %cst_8 : f32 to vector<8x128xf32>
    %24 = arith.subf %23, %8 : vector<8x128xf32>
    %25 = arith.select %13, %22, %24 : vector<8x128xi1>, vector<8x128xf32>
    %cst_9 = arith.constant 9.99999974E-5 : f32
    %cst_10 = arith.constant 0.999899983 : f32
    %26 = vector.broadcast %cst_9 : f32 to vector<8x128xf32>
    %27 = arith.maximumf %26, %15 : vector<8x128xf32>
    %28 = vector.broadcast %cst_10 : f32 to vector<8x128xf32>
    %29 = arith.minimumf %28, %27 : vector<8x128xf32>
    %cst_11 = arith.constant -9.21034049 : f32
    %cst_12 = arith.constant -1.000050e-04 : f32
    %30 = vector.broadcast %cst_11 : f32 to vector<8x128xf32>
    %31 = arith.maximumf %30, %19 : vector<8x128xf32>
    %32 = vector.broadcast %cst_12 : f32 to vector<8x128xf32>
    %33 = arith.minimumf %32, %31 : vector<8x128xf32>
    %cst_13 = arith.constant -9.21034049 : f32
    %cst_14 = arith.constant -1.000050e-04 : f32
    %34 = vector.broadcast %cst_13 : f32 to vector<8x128xf32>
    %35 = arith.maximumf %34, %25 : vector<8x128xf32>
    %36 = vector.broadcast %cst_14 : f32 to vector<8x128xf32>
    %37 = arith.minimumf %36, %35 : vector<8x128xf32>
    %cst_15 = arith.constant 1.000000e+00 : f32
    %38 = vector.broadcast %cst_15 : f32 to vector<8x128xf32>
    %39 = arith.cmpf oeq, %1, %38 : vector<8x128xf32>
    %40 = arith.extui %39 : vector<8x128xi1> to vector<8x128xi32>
    %41 = arith.sitofp %40 : vector<8x128xi32> to vector<8x128xf32>
    %cst_16 = arith.constant 1.000000e+00 : f32
    %42 = vector.broadcast %cst_16 : f32 to vector<8x128xf32>
    %43 = arith.cmpf olt, %1, %42 : vector<8x128xf32>
    %44 = arith.extui %43 : vector<8x128xi1> to vector<8x128xi32>
    %45 = arith.sitofp %44 : vector<8x128xi32> to vector<8x128xf32>
    %cst_17 = arith.constant 1.000000e+00 : f32
    %46 = vector.broadcast %cst_17 : f32 to vector<8x128xf32>
    %47 = arith.subf %46, %1 : vector<8x128xf32>
    %48 = arith.mulf %47, %47 : vector<8x128xf32>
    %49 = arith.mulf %47, %47 : vector<8x128xf32>
    %50 = arith.mulf %48, %49 : vector<8x128xf32>
    %cst_18 = arith.constant 1.000000e+00 : f32
    %51 = vector.broadcast %cst_18 : f32 to vector<8x128xf32>
    %52 = arith.subf %51, %29 : vector<8x128xf32>
    %53 = arith.mulf %52, %52 : vector<8x128xf32>
    %54 = arith.mulf %33, %53 : vector<8x128xf32>
    %55 = arith.mulf %54, %41 : vector<8x128xf32>
    %56 = vector.shape_cast %55 : vector<8x128xf32> to vector<1x8x128xf32>
    %cst_19 = arith.constant dense<0.000000e+00> : vector<8x128xf32>
    %57 = vector.multi_reduction <add>, %56, %cst_19 [0] : vector<1x8x128xf32> to vector<8x128xf32>
    %c0_20 = arith.constant 0 : index
    %c0_21 = arith.constant 0 : index
    %c0_22 = arith.constant 0 : index
    %58 = vector.load %arg3[%c0_20, %c0_21, %c0_22] : memref<1x24x128xf32, #tpu.memory_space<vmem>>, vector<1x8x128xf32>
    %59 = vector.shape_cast %58 : vector<1x8x128xf32> to vector<8x128xf32>
    %60 = vector.shape_cast %57 : vector<8x128xf32> to vector<1x8x128xf32>
    tpu.vector_store %arg3[%c0_20, %c0_21, %c0_22], %60 {strides = array<i32>} : memref<1x24x128xf32, #tpu.memory_space<vmem>>, vector<1x8x128xf32>,
    %61 = arith.mulf %29, %29 : vector<8x128xf32>
    %62 = arith.mulf %37, %61 : vector<8x128xf32>
    %63 = arith.mulf %62, %50 : vector<8x128xf32>
    %64 = arith.mulf %63, %45 : vector<8x128xf32>
    %65 = vector.shape_cast %64 : vector<8x128xf32> to vector<1x8x128xf32>
    %cst_23 = arith.constant dense<0.000000e+00> : vector<8x128xf32>
    %66 = vector.multi_reduction <add>, %65, %cst_23 [0] : vector<1x8x128xf32> to vector<8x128xf32>
    %c0_24 = arith.constant 0 : index
    %c8 = arith.constant 8 : index
    %c0_25 = arith.constant 0 : index
    %67 = vector.load %arg3[%c0_24, %c8, %c0_25] : memref<1x24x128xf32, #tpu.memory_space<vmem>>, vector<1x8x128xf32>
    %68 = vector.shape_cast %67 : vector<1x8x128xf32> to vector<8x128xf32>
    %69 = vector.shape_cast %66 : vector<8x128xf32> to vector<1x8x128xf32>
    tpu.vector_store %arg3[%c0_24, %c8, %c0_25], %69 {strides = array<i32>} : memref<1x24x128xf32, #tpu.memory_space<vmem>>, vector<1x8x128xf32>,
    %70 = vector.shape_cast %41 : vector<8x128xf32> to vector<1x8x128xf32>
    %cst_26 = arith.constant dense<0.000000e+00> : vector<8x128xf32>
    %71 = vector.multi_reduction <add>, %70, %cst_26 [0] : vector<1x8x128xf32> to vector<8x128xf32>
    %c0_27 = arith.constant 0 : index
    %c16 = arith.constant 16 : index
    %c0_28 = arith.constant 0 : index
    %72 = vector.load %arg3[%c0_27, %c16, %c0_28] : memref<1x24x128xf32, #tpu.memory_space<vmem>>, vector<1x8x128xf32>
    %73 = vector.shape_cast %72 : vector<1x8x128xf32> to vector<8x128xf32>
    %74 = vector.shape_cast %71 : vector<8x128xf32> to vector<1x8x128xf32>
    tpu.vector_store %arg3[%c0_27, %c16, %c0_28], %74 {strides = array<i32>} : memref<1x24x128xf32, #tpu.memory_space<vmem>>, vector<1x8x128xf32>,
    return
  }
  func.func @transform_0(%arg0: i32) -> (i32, i32) {
    %c0_i32 = arith.constant 0 : i32
    %c0_i32_0 = arith.constant 0 : i32
    return %arg0, %c0_i32 : i32, i32
  }
  func.func @transform_1(%arg0: i32) -> (i32, i32) {
    %c0_i32 = arith.constant 0 : i32
    %c0_i32_0 = arith.constant 0 : i32
    return %arg0, %c0_i32 : i32, i32
  }
  func.func @transform_2(%arg0: i32) -> (i32, i32, i32) {
    %c0_i32 = arith.constant 0 : i32
    %c0_i32_0 = arith.constant 0 : i32
    %c0_i32_1 = arith.constant 0 : i32
    return %arg0, %c0_i32, %c0_i32_0 : i32, i32, i32
  }
}

</mosaic_0001>

<bundles_post_ra>
// kernel: tpu_custom_call.1
= control target key start
LH: loop header
LB: loop body
LE: loop exit
PB: predicated region body
PF: predicated region fallthrough
CT: control target
= control target key end

     0   :  { %7 = vsyncpa [#allocation3], 0  ;;  %s245_s0 = inlined_call_operand.hbm [shape: f32[8,128], index: 0, kind: input, shape index: {}]   ;;  %s246_s1 = inlined_call_operand.hbm [shape: f32[8,128], index: 1, kind: input, shape index: {}]   ;;  %s247_s2 = inlined_call_operand.hbm [shape: f32[1,24,128], index: 2, kind: output, shape index: {}]  }
   0x1   :  { %8 = vsyncpa [#allocation6], 0 }
   0x2   :  { %9 = vsyncpa [#allocation4], 0  ;;  %s188_s9 = smov [#allocation2]   ;;  %s189_s11 = smov [#allocation5]  }
   0x3   :  { %s16_s10 = sshll.u32 %s188_s9, 4  ;;  %s26_s12 = sshll.u32 %s189_s11, 4  ;;  %s17_s10 = int_to_ptr.vmem [resolvable:$true] %s16_s10  ;;  %s27_s12 = int_to_ptr.vmem [resolvable:$true] %s26_s12 }
   0x4   :  { %s116_s15 = scalar_lea.hbm %s245_s0, 128 }
   0x5   :  { %p117_p0 = scmp.ne.s32.totalorder %s245_s0, %s116_s15  ;;  %p120_p1 = scmp.lt.u32.totalorder %s116_s15, %s245_s0 }
   0x7   :  { %p122_p2 = pnand %p120_p1, %p117_p0 }
   0x9   :  { %125 = shalt.err (!%p122_p2)
}
   0xa   :  { %s126_s20 = scalar_lea.vmem %s17_s10, 128  ;;  %p131_p4 = scmp.lt.s32.totalorder %s17_s10, %s17_s10 }
   0xb   :  { %p127_p3 = scmp.ne.s32.totalorder %s17_s10, %s126_s20  ;;  %p132_p5 = scmp.lt.s32.totalorder %s126_s20, %s126_s20 }
   0xd   :  { %p133_p6 = por %p132_p5, %p131_p4 }
   0xf   :  { %p134_p7 = pnand %p133_p6, %p127_p3 }
  0x11   :  { %137 = shalt.err (!%p134_p7)
}
  0x12   :  { %19 = dma.hbm_to_vmem [thread:$0]  %s245_s0, 128, %s17_s10, [#allocation3]  }
  0x13   :  { %s138_s25 = scalar_lea.hbm %s246_s1, 128 }
  0x14   :  { %p139_p8 = scmp.ne.s32.totalorder %s246_s1, %s138_s25  ;;  %p142_p9 = scmp.lt.u32.totalorder %s138_s25, %s246_s1 }
  0x16   :  { %p144_p10 = pnand %p142_p9, %p139_p8 }
  0x18   :  { %147 = shalt.err (!%p144_p10)
}
  0x19   :  { %s148_s30 = scalar_lea.vmem %s27_s12, 128  ;;  %p153_p12 = scmp.lt.s32.totalorder %s27_s12, %s27_s12 }
  0x1a   :  { %p149_p11 = scmp.ne.s32.totalorder %s27_s12, %s148_s30  ;;  %p154_p13 = scmp.lt.s32.totalorder %s148_s30, %s148_s30 }
  0x1c   :  { %p155_p0 = por %p154_p13, %p153_p12 }
  0x1e   :  { %p156_p1 = pnand %p155_p0, %p149_p11 }
  0x20   :  { %159 = shalt.err (!%p156_p1)
}
  0x21   :  { %29 = dma.hbm_to_vmem [thread:$0]  %s246_s1, 128, %s27_s12, [#allocation6]  }
  0x22   :  { %182 = dma.done.wait [#allocation3], 128  }
  0x23   :  { %183 = vsyncadd [#allocation3], 4294967168 }
  0x24   :  { %184 = dma.done.wait [#allocation6], 128  }
  0x25   :  { %185 = vsyncadd [#allocation6], 4294967168  ;;  %v36_v0 = vld [vmem:[#allocation2] sm:$0xff]  ;;  %v37_v1 = vld [vmem:[#allocation5] sm:$0xff]  ;;  %v190_v3 = vmov 0.0   ;;  %s191_s1 = smov [#allocation7]  }
  0x26   :  { %v38_v2 = vand.u32 2147483647, %v36_v0  ;;  %vm61_vm0 = vcmp.eq.f32.partialorder %v37_v1, 1.0  ;;  %v52_v9 = vsub.f32 0.0, %v36_v0  ;;  %vm46_vm1 = vcmp.ge.f32.partialorder %v36_v0, 0.0  ;;  %s89_s4 = sshll.u32 %s191_s1, 4  ;;  %s90_s4 = int_to_ptr.vmem [resolvable:$true] %s89_s4 }
  0x27   :  { %v102_v4 = vsel %vm61_vm0, 1.0, %v190_v3  ;;  %v67_v13 = vsub.f32 1.0, %v37_v1  ;;  %vm64_vm2 = vcmp.lt.f32.partialorder %v37_v1, 1.0  ;;  %s160_s5 = scalar_lea.vmem %s90_s4, 384  ;;  %p165_p3 = scmp.lt.s32.totalorder %s90_s4, %s90_s4 }
  0x28   :  { %v39_v5 = vsub.f32 0.0, %v38_v2  ;;  %83 = vst [vmem:[#allocation7 + $0x10] sm:$0xff] %v102_v4  ;;  %v103_v33 = vsel %vm64_vm2, 1.0, %v190_v3  ;;  %p161_p2 = scmp.ne.s32.totalorder %s90_s4, %s160_s5  ;;  %p166_p4 = scmp.lt.s32.totalorder %s160_s5, %s160_s5 }
  0x29   :  { %v68_v22 = vmul.f32 %v67_v13, %v67_v13 }
  0x2a   :  { %v40_v6 = vmul.f32 1.442695, %v39_v5  ;;  %p167_p5 = por %p166_p4, %p165_p3 }
  0x2b   :  { %v69_v29 = vmul.f32 %v68_v22, %v68_v22 }
  0x2c   :  { %110 = vpow2.f32 %v40_v6  ;;  %p168_p6 = pnand %p167_p5, %p161_p2 }
  0x36   :  { %v111_v7 = vpop.eup %110 }
  0x37   :  { %v42_v8 = vadd.f32 1.0, %v111_v7 }
  0x39   :  { %112 = vlog2.f32 %v42_v8 }
  0x3a   :  { %114 = vrcp.f32 %v42_v8 }
  0x43   :  { %v113_v10 = vpop.eup %112 }
  0x44   :  { %v115_v11 = vpop.eup %114  ;;  %v44_v12 = vmul.f32 0.6931472, %v113_v10 }
  0x45   :  { %v47_v14 = vmul.f32 %v115_v11, %v111_v7 }
  0x46   :  { %v49_v15 = vsub.f32 0.0, %v44_v12  ;;  %v50_v16 = vsub.f32 %v36_v0, %v44_v12  ;;  %v53_v17 = vsub.f32 %v52_v9, %v44_v12 }
  0x47   :  { %v48_v18 = vsel %vm46_vm1, %v115_v11, %v47_v14 }
  0x48   :  { %v51_v19 = vsel %vm46_vm1, %v49_v15, %v50_v16  ;;  %v55_v20 = vmax.f32 %v48_v18, 0.0001  ;;  %v54_v21 = vsel %vm46_vm1, %v53_v17, %v49_v15 }
  0x49   :  { %v57_v23 = vmax.f32 %v51_v19, -9.2103405  ;;  %v59_v24 = vmax.f32 %v54_v21, -9.2103405 }
  0x4a   :  { %v56_v25 = vmin.f32 %v55_v20, 0.9999 }
  0x4b   :  { %v60_v26 = vmin.f32 %v59_v24, -0.000100005  ;;  %v58_v27 = vmin.f32 %v57_v23, -0.000100005 }
  0x4c   :  { %v70_v28 = vsub.f32 1.0, %v56_v25  ;;  %v76_v30 = vmul.f32 %v56_v25, %v56_v25 }
  0x4e   :  { %v71_v31 = vmul.f32 %v70_v28, %v70_v28  ;;  %v77_v32 = vmul.f32 %v76_v30, %v60_v26 }
  0x50   :  { %v72_v34 = vmul.f32 %v71_v31, %v58_v27  ;;  %v78_v35 = vmul.f32 %v77_v32, %v69_v29 }
  0x52   :  { %v73_v36 = vmul.f32 %v102_v4, %v72_v34  ;;  %v79_v37 = vmul.f32 %v103_v33, %v78_v35 }
  0x54   :  { %75 = vst [vmem:[#allocation7] sm:$0xff] %v73_v36  ;;  %81 = vst [vmem:[#allocation7 + $0x8] sm:$0xff] %v79_v37 }
  0x55   :  { %171 = shalt.err (!%p168_p6)
}
  0x56   :  { %s172_s8 = scalar_lea.hbm %s247_s2, 384 }
  0x57   :  { %p173_p7 = scmp.ne.s32.totalorder %s247_s2, %s172_s8  ;;  %p176_p8 = scmp.lt.u32.totalorder %s172_s8, %s247_s2 }
  0x59   :  { %p178_p9 = pnand %p176_p8, %p173_p7 }
  0x5b   :  { %181 = shalt.err (!%p178_p9)
}
  0x5c   :  { %s192_s13 = smov 128   ;;  %s193_s14 = smov 8  }
  0x5d   :  { %95 = dma.vmem_to_hbm [thread:$0]  %s90_s4, 384, %s247_s2, [#allocation4], %s192_s13, %s192_s13, %s193_s14  }
  0x5e   :  { %186 = dma.done.wait [#allocation4], 384  }
  0x5f   :  { %187 = vsyncadd [#allocation4], 4294966912 }
  0x60   :  { %99 = vsyncpa [#allocation3], 1 }
  0x61   :  { %100 = vsyncpa [#allocation6], 1 }
  0x62   :  { %101 = vsyncpa [#allocation4], 1 }

</bundles_post_ra>
